<compile_context>
chip_gen: v7x
topology: tpu7x:2x2x1
jax: 0.10.0
libtpu: 0.0.40
codegen_flags: <defaults>
</compile_context>

<pallas_src>
import functools

import jax
import jax.numpy as jnp
from jax.experimental import pallas as pl
from jax.experimental.pallas import tpu as pltpu


def _round_up(x, m):
    return ((x + m - 1) // m) * m


def _vmem_limit_bytes():
    """~75% of per-core VMEM: ~96 MiB on v5e/v6e (128 MiB), ~48 MiB on v7x (64 MiB)."""
    try:
        cap = int(pltpu.get_tpu_info().vmem_capacity_bytes)
    except Exception:
        cap = 64 * 1024 * 1024
    return int(cap * 3 // 4)


# ----------------------------------------------------------------------------
# Phase 1: conv (+ReLU) + per-batch-element partial BN statistics.
# ----------------------------------------------------------------------------
def _conv_stats_kernel(x_ref, w_ref, y_ref, s_ref, ss_ref, *, K, Lout, relu, fat):
    # x_ref  : (1, Lp, Cin_pad)        one padded batch element, channels-last
    # w_ref  : fat   -> (K*Cin_pad, Cpad)   im2col-folded conv weights
    #          accum -> (K, Cin_pad, Cpad)  per-tap weights
    # y_ref  : (1, Lout, Cpad)         conv(+ReLU) output, compute_dtype
    # s_ref  : (1, 1, Cpad)            per-channel partial sum      (f32)
    # ss_ref : (1, 1, Cpad)            per-channel partial sum(y^2) (f32)
    x = x_ref[0]                                              # (Lp, Cin_pad)

    if fat:
        # Small-Cin path: lane-tile-aligned im2col segments, one fat matmul.
        cols = [x[k:k + Lout, :] for k in range(K)]           # each (Lout, Cin_pad)
        y = jnp.dot(jnp.concatenate(cols, axis=-1), w_ref[...],
                    preferred_element_type=jnp.float32)       # (Lout, Cpad) f32
    else:
        # Large-Cin path: K accumulating matmuls into the f32 result
        # (no (Lout, K*Cin) VMEM temp, no lane-axis concatenate).
        y = jnp.dot(x[0:Lout, :], w_ref[0],
                    preferred_element_type=jnp.float32)
        for k in range(1, K):
            y = y + jnp.dot(x[k:k + Lout, :], w_ref[k],
                            preferred_element_type=jnp.float32)

    if relu:
        y = jnp.maximum(y, 0.0)

    y_ref[0] = y.astype(y_ref.dtype)

    # Partial BN statistics for this batch element (f32).
    s_ref[0] = jnp.sum(y, axis=0, keepdims=True)              # (1, Cpad)
    ss_ref[0] = jnp.sum(y * y, axis=0, keepdims=True)         # (1, Cpad)


# ----------------------------------------------------------------------------
# Phase 2: fused BN application + in-kernel transpose to NCL layout.
# ----------------------------------------------------------------------------
def _bn_apply_transpose_kernel(y_ref, scale_ref, shift_ref, o_ref):
    # y_ref     : (1, tile_l, Cpad)   (compute_dtype)
    # scale_ref : (1, 1, Cpad)        f32
    # shift_ref : (1, 1, Cpad)        f32
    # o_ref     : (1, Cpad, tile_l)   NCL output tile
    y = y_ref[0].astype(jnp.float32)                          # (tile_l, Cpad)
    out = y * scale_ref[0] + shift_ref[0]                     # VPU mul-add
    o_ref[0] = jnp.transpose(out, (1, 0)).astype(o_ref.dtype)  # XLU transpose


def _pick_l_tile(lout, target):
    """Lane-dense phase-2 tile: full dim if small, else a multiple of 128."""
    if lout <= target:
        return lout
    return max((target // 128) * 128, 128)


def batchnorm_conv(x_ncl, conv_weight, gamma, beta, *, relu=True, eps=1e-5,
                   compute_dtype=jnp.float32, out_dtype=None, conv_impl="auto"):
    """x_ncl: (N, Cin, L), conv_weight: (Cout, Cin, K) -- PyTorch conventions.

    compute_dtype=jnp.bfloat16 -> bf16 matmul inputs AND bf16 y intermediate
    (f32 accumulation / statistics kept); out_dtype lets production callers
    also keep the final output in bf16.
    """
    N, Cin, L = x_ncl.shape
    Cout, _, K = conv_weight.shape
    pad = K // 2
    Lp = L + 2 * pad
    Lout = Lp - K + 1                          # == L for odd K ("same" behavior)
    Cpad = _round_up(Cout, 128)                # lane-dense output channels
    Cin_pad = _round_up(Cin, 128)              # lane-dense input channels
    out_dtype = x_ncl.dtype if out_dtype is None else out_dtype
    vmem_limit = _vmem_limit_bytes()

    if conv_impl == "auto":
        fat = Cin < 128
    elif conv_impl == "fat":
        fat = True
    elif conv_impl == "accum":
        fat = False
    else:
        raise ValueError(f"unknown conv_impl {conv_impl!r}")

    # --- wrapper glue (tiny vs. the conv itself): layout, pad, weight fold ---
    # TODO(synk): for stacked BatchNormConv layers keep activations in NLC
    #             between layers so this input transpose doesn't round-trip HBM.
    x_nlc = jnp.transpose(x_ncl, (0, 2, 1)).astype(jnp.float32)       # (N, L, Cin)
    x_pad = jnp.pad(x_nlc, ((0, 0), (pad, pad), (0, Cin_pad - Cin)))  # (N, Lp, Cin_pad)
    x_pad = x_pad.astype(compute_dtype)

    w = jnp.transpose(conv_weight, (2, 1, 0)).astype(jnp.float32)     # (K, Cin, Cout)
    w = jnp.pad(w, ((0, 0), (0, Cin_pad - Cin), (0, Cpad - Cout)))    # (K, Cin_pad, Cpad)
    if fat:
        w_arg = w.reshape(K * Cin_pad, Cpad).astype(compute_dtype)
        w_spec = pl.BlockSpec((K * Cin_pad, Cpad), lambda n: (0, 0))
    else:
        w_arg = w.astype(compute_dtype)
        w_spec = pl.BlockSpec((K, Cin_pad, Cpad), lambda n: (0, 0, 0))

    kernel1 = functools.partial(_conv_stats_kernel, K=K, Lout=Lout, relu=relu,
                                fat=fat)
    y, psum, psumsq = pl.pallas_call(
        kernel1,
        grid=(N,),
        in_specs=[
            pl.BlockSpec((1, Lp, Cin_pad), lambda n: (n, 0, 0)),   # x (per batch elem)
            w_spec,                                                # weights (resident)
        ],
        out_specs=[
            pl.BlockSpec((1, Lout, Cpad), lambda n: (n, 0, 0)),    # y
            pl.BlockSpec((1, 1, Cpad), lambda n: (n, 0, 0)),       # partial sum
            pl.BlockSpec((1, 1, Cpad), lambda n: (n, 0, 0)),       # partial sum of sq
        ],
        out_shape=(
            jax.ShapeDtypeStruct((N, Lout, Cpad), compute_dtype),  # bf16 on prod path
            jax.ShapeDtypeStruct((N, 1, Cpad), jnp.float32),
            jax.ShapeDtypeStruct((N, 1, Cpad), jnp.float32),
        ),
        compiler_params=pltpu.CompilerParams(
            dimension_semantics=("parallel",),
            vmem_limit_bytes=vmem_limit,
        ),
    )(x_pad, w_arg)

    # --- fold BN into per-channel scale/shift (tiny N x Cpad work, plain JAX) ---
    # NOTE: E[y^2]-E[y]^2 in f32; clamp against cancellation. For very long
    #       sequences a shifted/Welford accumulation would be safer.
    count = float(N * Lout)
    total = jnp.sum(psum[:, 0, :], axis=0)                            # (Cpad,)
    total_sq = jnp.sum(psumsq[:, 0, :], axis=0)                       # (Cpad,)
    mean = total / count
    var = jnp.maximum(total_sq / count - mean * mean, 0.0)            # biased (training BN)
    gamma_p = jnp.pad(gamma.astype(jnp.float32), (0, Cpad - Cout))
    beta_p = jnp.pad(beta.astype(jnp.float32), (0, Cpad - Cout))
    scale = gamma_p * jax.lax.rsqrt(var + eps)
    shift = beta_p - mean * scale
    scale3 = scale.reshape(1, 1, Cpad)
    shift3 = shift.reshape(1, 1, Cpad)

    # --- phase 2: apply normalization, emit NCL directly (in-kernel transpose) ---
    tile_target = 1024 if vmem_limit >= 80 * 1024 * 1024 else 512
    tile_l = _pick_l_tile(Lout, tile_target)
    out_ncl_pad = pl.pallas_call(
        _bn_apply_transpose_kernel,
        grid=(N, pl.cdiv(Lout, tile_l)),
        in_specs=[
            pl.BlockSpec((1, tile_l, Cpad), lambda n, l: (n, l, 0)),
            pl.BlockSpec((1, 1, Cpad), lambda n, l: (0, 0, 0)),
            pl.BlockSpec((1, 1, Cpad), lambda n, l: (0, 0, 0)),
        ],
        out_specs=pl.BlockSpec((1, Cpad, tile_l), lambda n, l: (n, 0, l)),
        out_shape=jax.ShapeDtypeStruct((N, Cpad, Lout), out_dtype),
        compiler_params=pltpu.CompilerParams(
            dimension_semantics=("parallel", "parallel"),
            vmem_limit_bytes=vmem_limit,
        ),
    )(y, scale3, shift3)

    # Drop channel padding (no-op copy when Cout is already a multiple of 128,
    # e.g. the real Tacotron layers with 512 channels).
    if Cpad != Cout:
        return out_ncl_pad[:, :Cout, :]
    return out_ncl_pad


# ----------------------------------------------------------------------------
# Pure-JAX reference mirroring the PyTorch forward (training-mode BN).
# ----------------------------------------------------------------------------
def _reference(x_ncl, conv_weight, gamma, beta, *, relu=True, eps=1e-5):
    K = conv_weight.shape[-1]
    pad = K // 2
    y = jax.lax.conv_general_dilated(
        x_ncl.astype(jnp.float32), conv_weight.astype(jnp.float32),
        window_strides=(1,), padding=[(pad, pad)],
        dimension_numbers=("NCH", "OIH", "NCH"),
    )
    if relu:
        y = jnp.maximum(y, 0.0)
    mean = jnp.mean(y, axis=(0, 2), keepdims=True)
    var = jnp.mean((y - mean) ** 2, axis=(0, 2), keepdims=True)
    y_hat = (y - mean) / jnp.sqrt(var + eps)
    return y_hat * gamma.reshape(1, -1, 1) + beta.reshape(1, -1, 1)


if __name__ == "__main__":
    # Small shapes consistent with the module: batch=2, in_channels=4,
    # out_channels=8, seq_len=16, kernel=5 (padding=2 -> same-length output).
    N, Cin, Cout, L, K = 2, 4, 8, 16, 5

    key = jax.random.PRNGKey(0)
    k_x, k_w, k_g, k_b = jax.random.split(key, 4)
    x = jax.random.normal(k_x, (N, Cin, L), dtype=jnp.float32)
    conv_weight = (jax.random.normal(k_w, (Cout, Cin, K), dtype=jnp.float32)
                   * (1.0 / (Cin * K) ** 0.5))
    gamma = 1.0 + 0.1 * jax.random.normal(k_g, (Cout,), dtype=jnp.float32)
    beta = 0.1 * jax.random.normal(k_b, (Cout,), dtype=jnp.float32)

    ref = _reference(x, conv_weight, gamma, beta, relu=True)

    # f32, auto path (fat im2col matmul since Cin < 128) -- bit-accurate check.
    out = jax.block_until_ready(
        batchnorm_conv(x, conv_weight, gamma, beta, relu=True))
    assert out.shape == (N, Cout, L), out.shape
    assert jnp.allclose(out, ref, atol=2e-4, rtol=2e-4), \
        float(jnp.max(jnp.abs(out - ref)))

    # f32, forced accumulating-matmul path (production Cin>=128 code path).
    out_acc = jax.block_until_ready(
        batchnorm_conv(x, conv_weight, gamma, beta, relu=True, conv_impl="accum"))
    assert jnp.allclose(out_acc, ref, atol=2e-4, rtol=2e-4), \
        float(jnp.max(jnp.abs(out_acc - ref)))

    # relu=False path.
    out_nr = jax.block_until_ready(
        batchnorm_conv(x, conv_weight, gamma, beta, relu=False))
    ref_nr = _reference(x, conv_weight, gamma, beta, relu=False)
    assert jnp.allclose(out_nr, ref_nr, atol=2e-4, rtol=2e-4), \
        float(jnp.max(jnp.abs(out_nr - ref_nr)))

    # bf16 production path: bf16 matmul inputs + bf16 y intermediate
    # (f32 accumulation / stats); loose tolerance.
    out_bf16 = jax.block_until_ready(
        batchnorm_conv(x, conv_weight, gamma, beta, relu=True,
                       compute_dtype=jnp.bfloat16))
    assert out_bf16.shape == (N, Cout, L)
    assert jnp.allclose(out_bf16, ref, atol=1e-1, rtol=1e-1), \
        float(jnp.max(jnp.abs(out_bf16 - ref)))

    print("KERNEL_OK")
</pallas_src>

<mosaic_0001>
module attributes {stable_mosaic.version = 11 : i64} {
  func.func @_conv_stats_kernel(%arg0: i32, %arg1: memref<1x20x128xf32, #tpu.memory_space<vmem>>, %arg2: memref<640x128xf32, #tpu.memory_space<vmem>>, %arg3: memref<1x16x128xf32, #tpu.memory_space<vmem>>, %arg4: memref<1x1x128xf32, #tpu.memory_space<vmem>>, %arg5: memref<1x1x128xf32, #tpu.memory_space<vmem>>) attributes {dimension_semantics = [#tpu.dimension_semantics<parallel>], iteration_bounds = array<i64: 2>, scalar_prefetch = 0 : i64, scratch_operands = 0 : i64, tpu.core_type = #tpu.core_type<tc>, window_params = [{transform_indices = @transform_0, window_bounds = array<i64: 1, 20, 128>}, {pipeline_mode = #tpu.pipeline_mode<synchronous>, transform_indices = @transform_1, window_bounds = array<i64: 640, 128>}, {transform_indices = @transform_2, window_bounds = array<i64: 1, 16, 128>}, {transform_indices = @transform_3, window_bounds = array<i64: 1, 1, 128>}, {transform_indices = @transform_4, window_bounds = array<i64: 1, 1, 128>}]} {
    %c0 = arith.constant 0 : index
    %c0_0 = arith.constant 0 : index
    %c0_1 = arith.constant 0 : index
    %0 = vector.load %arg1[%c0, %c0_0, %c0_1] : memref<1x20x128xf32, #tpu.memory_space<vmem>>, vector<1x20x128xf32>
    %1 = vector.shape_cast %0 : vector<1x20x128xf32> to vector<20x128xf32>
    %2 = vector.extract_strided_slice %1 {offsets = [0, 0], sizes = [16, 128], strides = [1, 1]} : vector<20x128xf32> to vector<16x128xf32>
    %3 = vector.extract_strided_slice %1 {offsets = [1, 0], sizes = [16, 128], strides = [1, 1]} : vector<20x128xf32> to vector<16x128xf32>
    %4 = vector.extract_strided_slice %1 {offsets = [2, 0], sizes = [16, 128], strides = [1, 1]} : vector<20x128xf32> to vector<16x128xf32>
    %5 = vector.extract_strided_slice %1 {offsets = [3, 0], sizes = [16, 128], strides = [1, 1]} : vector<20x128xf32> to vector<16x128xf32>
    %6 = vector.extract_strided_slice %1 {offsets = [4, 0], sizes = [16, 128], strides = [1, 1]} : vector<20x128xf32> to vector<16x128xf32>
    %7 = tpu.concatenate %2, %3, %4, %5, %6 in 1 : vector<16x128xf32>, vector<16x128xf32>, vector<16x128xf32>, vector<16x128xf32>, vector<16x128xf32> -> vector<16x640xf32>
    %c0_2 = arith.constant 0 : index
    %c0_3 = arith.constant 0 : index
    %8 = vector.load %arg2[%c0_2, %c0_3] : memref<640x128xf32, #tpu.memory_space<vmem>>, vector<640x128xf32>
    %cst = arith.constant dense<0.000000e+00> : vector<16x128xf32>
    %9 = tpu.matmul %7, %8, %cst {dimension_numbers = #tpu.dot_dimension_numbers<[1], [0], [0], [1], [0, 0, 1, 1], [], []>} : vector<16x640xf32>, vector<640x128xf32>, vector<16x128xf32> -> vector<16x128xf32>
    %cst_4 = arith.constant 0.000000e+00 : f32
    %10 = vector.broadcast %cst_4 : f32 to vector<16x128xf32>
    %11 = arith.maximumf %9, %10 : vector<16x128xf32>
    %c0_5 = arith.constant 0 : index
    %c0_6 = arith.constant 0 : index
    %c0_7 = arith.constant 0 : index
    %12 = vector.load %arg3[%c0_5, %c0_6, %c0_7] : memref<1x16x128xf32, #tpu.memory_space<vmem>>, vector<1x16x128xf32>
    %13 = vector.shape_cast %12 : vector<1x16x128xf32> to vector<16x128xf32>
    %14 = vector.shape_cast %11 : vector<16x128xf32> to vector<1x16x128xf32>
    tpu.vector_store %arg3[%c0_5, %c0_6, %c0_7], %14 {strides = array<i32>} : memref<1x16x128xf32, #tpu.memory_space<vmem>>, vector<1x16x128xf32>,
    %cst_8 = arith.constant dense<0.000000e+00> : vector<128xf32>
    %15 = vector.multi_reduction <add>, %11, %cst_8 [0] : vector<16x128xf32> to vector<128xf32>
    %16 = vector.shape_cast %15 : vector<128xf32> to vector<1x128xf32>
    %c0_9 = arith.constant 0 : index
    %c0_10 = arith.constant 0 : index
    %c0_11 = arith.constant 0 : index
    %17 = vector.load %arg4[%c0_9, %c0_10, %c0_11] : memref<1x1x128xf32, #tpu.memory_space<vmem>>, vector<1x1x128xf32>
    %18 = vector.shape_cast %17 : vector<1x1x128xf32> to vector<1x128xf32>
    %19 = vector.shape_cast %16 : vector<1x128xf32> to vector<1x1x128xf32>
    tpu.vector_store %arg4[%c0_9, %c0_10, %c0_11], %19 {strides = array<i32>} : memref<1x1x128xf32, #tpu.memory_space<vmem>>, vector<1x1x128xf32>,
    %20 = arith.mulf %11, %11 : vector<16x128xf32>
    %cst_12 = arith.constant dense<0.000000e+00> : vector<128xf32>
    %21 = vector.multi_reduction <add>, %20, %cst_12 [0] : vector<16x128xf32> to vector<128xf32>
    %22 = vector.shape_cast %21 : vector<128xf32> to vector<1x128xf32>
    %c0_13 = arith.constant 0 : index
    %c0_14 = arith.constant 0 : index
    %c0_15 = arith.constant 0 : index
    %23 = vector.load %arg5[%c0_13, %c0_14, %c0_15] : memref<1x1x128xf32, #tpu.memory_space<vmem>>, vector<1x1x128xf32>
    %24 = vector.shape_cast %23 : vector<1x1x128xf32> to vector<1x128xf32>
    %25 = vector.shape_cast %22 : vector<1x128xf32> to vector<1x1x128xf32>
    tpu.vector_store %arg5[%c0_13, %c0_14, %c0_15], %25 {strides = array<i32>} : memref<1x1x128xf32, #tpu.memory_space<vmem>>, vector<1x1x128xf32>,
    return
  }
  func.func @transform_0(%arg0: i32) -> (i32, i32, i32) {
    %c0_i32 = arith.constant 0 : i32
    %c0_i32_0 = arith.constant 0 : i32
    %c0_i32_1 = arith.constant 0 : i32
    return %arg0, %c0_i32, %c0_i32_0 : i32, i32, i32
  }
  func.func @transform_1(%arg0: i32) -> (i32, i32) {
    %c0_i32 = arith.constant 0 : i32
    %c0_i32_0 = arith.constant 0 : i32
    %c0_i32_1 = arith.constant 0 : i32
    return %c0_i32, %c0_i32_0 : i32, i32
  }
  func.func @transform_2(%arg0: i32) -> (i32, i32, i32) {
    %c0_i32 = arith.constant 0 : i32
    %c0_i32_0 = arith.constant 0 : i32
    %c0_i32_1 = arith.constant 0 : i32
    return %arg0, %c0_i32, %c0_i32_0 : i32, i32, i32
  }
  func.func @transform_3(%arg0: i32) -> (i32, i32, i32) {
    %c0_i32 = arith.constant 0 : i32
    %c0_i32_0 = arith.constant 0 : i32
    %c0_i32_1 = arith.constant 0 : i32
    return %arg0, %c0_i32, %c0_i32_0 : i32, i32, i32
  }
  func.func @transform_4(%arg0: i32) -> (i32, i32, i32) {
    %c0_i32 = arith.constant 0 : i32
    %c0_i32_0 = arith.constant 0 : i32
    %c0_i32_1 = arith.constant 0 : i32
    return %arg0, %c0_i32, %c0_i32_0 : i32, i32, i32
  }
}

</mosaic_0001>

<bundles_post_ra>
// kernel: tpu_custom_call.1
= control target key start
LH: loop header
LB: loop body
LE: loop exit
PB: predicated region body
PF: predicated region fallthrough
CT: control target
= control target key end

     0   :  { %10 = vsyncpa [#allocation3], 0  ;;  %s1513_s0 = inlined_call_operand.vmem [shape: f32[2,20,128], index: 0, kind: input, shape index: {}]   ;;  %s1514_s1 = inlined_call_operand.hbm [shape: f32[640,128], index: 1, kind: input, shape index: {}]   ;;  %s1515_s2 = inlined_call_operand.hbm [shape: f32[2,16,128], index: 2, kind: output, shape index: {0}]   ;;  %s1516_s3 = inlined_call_operand.hbm [shape: f32[2,1,128], index: 3, kind: output, shape index: {1}]   ;;  %s1517_s4 = inlined_call_operand.hbm [shape: f32[2,1,128], index: 4, kind: output, shape index: {2}]  }
   0x1   :  { %11 = vsyncpa [#allocation4], 0 }
   0x2   :  { %13 = vsyncpa [#allocation4 + $0x1], 0 }
   0x3   :  { %14 = vsyncpa [#allocation7], 0 }
   0x4   :  { %16 = vsyncpa [#allocation7 + $0x1], 0  ;;  %s1262_s15 = smov 0   ;;  %s1264_s16 = smov 0  }
   0x5   :  { %s1266_s17 = smov 0   ;;  %s1268_s18 = smov 0  }
   0x6 LB: > { %s1283_s19 = sadd.s32 4294967295, %s1227_s18   ;;  %s767_s20 = sadd.s32 4294967294, %s1227_s18   ;;  %s1227_s18 = sphi %s1268_s18, %s1533_s18   ;;  %s1223_s17 = sphi %s1266_s17, %s1532_s17   ;;  %s1219_s16 = sphi %s1264_s16, %s1531_s16   ;;  %s1215_s15 = sphi %s1262_s15, %s1530_s15  }
   0x7   : > { %s1287_s21 = sadd.s32 1, %s1227_s18   ;;  %s76_s22 = sadd.s32 1, %s1223_s17 }
   0x8   : > { %s73_s23 = ssub.s32 %s1227_s18, %s1287_s21  ;;  %p86_p0 = scmp.ne.s32.totalorder %s1223_s17, %s1219_s16 }
   0x9   : > { %p74_p1 = scmp.eq.s32.totalorder %s73_s23, 0  ;;  %p87_p2 = scmp.eq.s32.totalorder %s1283_s19, 1 }
   0xa   : > { %p92_p3 = scmp.ne.s32.totalorder %s1219_s16, %s1215_s15  ;;  %p93_p4 = scmp.eq.s32.totalorder %s767_s20, 1 }
   0xb   : > { %s1300_s24 = scalar_select %p74_p1, %s1223_s17, %s76_s22  }
   0xc   : > { %p1302_p5 = por %p87_p2, %p86_p0  ;;  %p1306_p6 = por %p93_p4, %p92_p3 }
   0xd   : > { %p768_p7 = scmp.ge.s32.totalorder %s1227_s18, 1  ;;  %p152_p8 = scmp.lt.s32.totalorder %s1227_s18, 3 }
   0xe   : > { %s1521_s25 = scalar_select %p1302_p5, 1, 0 }
   0xf   : > { %s1522_s26 = scalar_select %p1306_p6, 1, 0 }
  0x10   : > { %p1518_p9 = scmp.eq.s32.totalorder %s1283_s19, 0  ;;  %p1313_p10 = pnand %p768_p7, %p152_p8 }
  0x11   : > { %s1229_s28 = smov [#allocation2]   ;;  %s1073_s7 = scalar_lea.hbm %s1514_s1, 10240 }
  0x12   : > { %s1523_s27 = scalar_select %p1313_p10, 1, 0 }
  0x13   : > { %s164_s29 = sshll.u32 %s1229_s28, 4  ;;  %p1019_p11 = pneg %p1313_p10  ;;  %s165_s29 = int_to_ptr.vmem [resolvable:$true] %s164_s29 }
  0x14   : > { %p1074_p13 = scmp.ne.s32.totalorder %s1514_s1, %s1073_s7  ;;  %p1080_p3 = scmp.lt.u32.totalorder %s1073_s7, %s1514_s1 }
  0x15   : > { %p1321_p12 = pnand %p1518_p9, %p1019_p11 }
  0x17   : > { %p1075_p0 = pneg %p1321_p12 }
  0x19   : > { %p1076_p1 = pnand %p1075_p0, %p1074_p13 }
  0x1b   : > { %p1077_p2 = pneg %p1076_p1 }
  0x1d   : > { %p1082_p4 = pnand %p1080_p3, %p1077_p2 }
  0x1f   : > { %1085 = shalt.err (!%p1082_p4)
}
  0x20   : > { %s1086_s12 = scalar_lea.vmem %s165_s29, 10240  ;;  %p1094_p9 = scmp.lt.s32.totalorder %s165_s29, %s165_s29 }
  0x21   : > { %p1087_p7 = scmp.ne.s32.totalorder %s165_s29, %s1086_s12  ;;  %p1095_p6 = scmp.lt.s32.totalorder %s1086_s12, %s1086_s12 }
  0x23   : > { %p1089_p8 = pnand %p1087_p7, %p1075_p0  ;;  %p1096_p5 = por %p1095_p6, %p1094_p9 }
  0x25   : > { %p1090_p11 = pneg %p1089_p8 }
  0x27   : > { %p1097_p10 = pnand %p1096_p5, %p1090_p11 }
  0x29   : > { %1100 = shalt.err (!%p1097_p10)
}
  0x2a   : > { %s1230_s13 = smov 128   ;;  %s1231_s14 = smov 8  }
  0x2b   : > { %1022 = dma.hbm_to_vmem [thread:$0]  (!%p1321_p12), %s1514_s1, 10240, %s165_s29, [#allocation3], %s1230_s13, %s1230_s13, %s1231_s14  }
  0x2c   : > { %p1525_p13 = scmp.ne.s32.totalorder %s1523_s27, 0 }
  0x2d   : > { %p1526_p1 = scmp.eq.s32.totalorder (!%p1525_p13), %s1283_s19, 0 }
  0x2e   : > { %188 = sbr.rel (%p1525_p13) target bundleno = 403 (0x193), region = 28 }
  0x35   : > { %1202 = dma.done.wait (%p1526_p1), [#allocation3], 10240   ;;  %p1527_p0 = pmov %p1526_p1 }
  0x36   : > { %v281_v0 = vld [vmem:[#allocation2 + $0x80] sm:$0xff]  ;;  %v282_v1 = vld [vmem:[#allocation2 + $0x88] sm:$0xff]  ;;  %v283_v11 = vld [vmem:[#allocation2 + $0x90] sm:$0xff]  ;;  %p222_p5 = scmp.lt.s32.totalorder %s1283_s19, 1  ;;  %vm233_vm0 = vcmask 1046528   ;;  %vm249_vm1 = vcmask 1044480  }
  0x37   : > { %1204 = vsyncadd (%p1527_p0), [#allocation3], 4294957056  ;;  %v313_v2 = vld [vmem:[#allocation2 + $0x180] sm:$0xff]  ;;  %v912_v3 = vpack.c.bf16 %v282_v1, %v281_v0  ;;  %v314_v4 = vld [vmem:[#allocation2 + $0x188] sm:$0xff]  ;;  %vm241_vm2 = vcmask 1045504   ;;  %vm257_vm3 = vcmask 1043456  }
  0x38   : > { %v265_v5 = vld [vmem:[#allocation2] sm:$0xff]  ;;  %v266_v6 = vld [vmem:[#allocation2 + $0x8] sm:$0xff]  ;;  %v944_v7 = vpack.c.bf16 %v314_v4, %v313_v2  ;;  %v284_v13 = vld [vmem:[#allocation2 + $0x98] sm:$0xff]  ;;  %s1351_s27 = scalar_select %p222_p5, %s1283_s19, 1 }
  0x39   : > { %v914_v8 = vpack.c.bf16 %v266_v6, %v265_v5  ;;  %v297_v9 = vld [vmem:[#allocation2 + $0x100] sm:$0xff]  ;;  %v298_v10 = vld [vmem:[#allocation2 + $0x108] sm:$0xff]  ;;  %913 = vmatprep.subr.bf16.mxu0 %v912_v3  ;;  %v315_v14 = vld [vmem:[#allocation2 + $0x190] sm:$0xff]  ;;  %v916_v16 = vpack.c.bf16 %v284_v13, %v283_v11  ;;  %s1391_s6 = sand.u32 1, %s1219_s16   ;;  %s782_s10 = sshll.u32 %s1283_s19, 8 }
  0x3a   : > { %v946_v12 = vpack.c.bf16 %v298_v10, %v297_v9  ;;  %v316_v15 = vld [vmem:[#allocation2 + $0x198] sm:$0xff]  ;;  %945 = vmatprep.subr.bf16.mxu1 %v944_v7  ;;  %v267_v18 = vld [vmem:[#allocation2 + $0x10] sm:$0xff]  ;;  %v285_v23 = vld [vmem:[#allocation2 + $0xa0] sm:$0xff]  ;;  %s1008_s28 = smul.u32 24, %s1351_s27  ;;  %s773_s7 = sshll.u32 %s1391_s6, 4 }
  0x3b   : > { %915 = vmatpush3.bf16.msra.mxu0 %v914_v8  ;;  %v948_v17 = vpack.c.bf16 %v316_v15, %v315_v14  ;;  %v268_v19 = vld [vmem:[#allocation2 + $0x18] sm:$0xff]  ;;  %v299_v20 = vld [vmem:[#allocation2 + $0x110] sm:$0xff]  ;;  %v286_v24 = vld [vmem:[#allocation2 + $0xa8] sm:$0xff]  ;;  %s209_s8 = scalar_lea.vmem [#allocation5], %s773_s7  ;;  %s1400_s13 = scalar_lea.hbm %s1515_s2, %s782_s10 }
  0x3c   : > { %947 = vmatpush3.bf16.msra.mxu1 %v946_v12  ;;  %v918_v21 = vpack.c.bf16 %v268_v19, %v267_v18  ;;  %v300_v22 = vld [vmem:[#allocation2 + $0x118] sm:$0xff]  ;;  %917 = vmatprep.subr.bf16.mxu0 %v916_v16  ;;  %v920_v26 = vpack.c.bf16 %v286_v24, %v285_v23  ;;  %v317_v27 = vld [vmem:[#allocation2 + $0x1a0] sm:$0xff]  ;;  %v318_v28 = vld [vmem:[#allocation2 + $0x1a8] sm:$0xff]  ;;  %s1357_s5 = scalar_lea.vmem %s1513_s0, %s1008_s28  ;;  %s614_s9 = sshll.u32 %s209_s8, 4  ;;  %s1395_s9 = int_to_ptr.vmem [resolvable:$true] %s614_s9 }
  0x3d   : > { %949 = vmatprep.subr.bf16.mxu1 %v948_v17  ;;  %v950_v25 = vpack.c.bf16 %v300_v22, %v299_v20  ;;  %v269_v29 = vld [vmem:[#allocation2 + $0x20] sm:$0xff]  ;;  %v952_v30 = vpack.c.bf16 %v318_v28, %v317_v27  ;;  %v270_v31 = vld [vmem:[#allocation2 + $0x28] sm:$0xff]  ;;  %v287_v35 = vld [vmem:[#allocation2 + $0xb0] sm:$0xff]  ;;  %s593_s14 = scalar_lea.sflag [#allocation4], %s1391_s6  ;;  %s1101_s22 = scalar_lea.vmem %s1395_s9, 256 }
  0x3e   : > { %v301_v32 = vld [vmem:[#allocation2 + $0x120] sm:$0xff]  ;;  %v302_v33 = vld [vmem:[#allocation2 + $0x128] sm:$0xff]  ;;  %v922_v34 = vpack.c.bf16 %v270_v31, %v269_v29  ;;  %v288_v36 = vld [vmem:[#allocation2 + $0xb8] sm:$0xff]  ;;  %p1102_p6 = scmp.ne.s32.totalorder %s1395_s9, %s1101_s22  ;;  %p1528_p9 = scmp.ne.s32.totalorder %s1521_s25, 0 }
  0x3f   : > { %919 = vmatpush3.bf16.msra.mxu0 %v918_v21  ;;  %v319_v37 = vld [vmem:[#allocation2 + $0x1b0] sm:$0xff]  ;;  %v954_v38 = vpack.c.bf16 %v302_v33, %v301_v32  ;;  %v924_v39 = vpack.c.bf16 %v288_v36, %v287_v35  ;;  %v320_v40 = vld [vmem:[#allocation2 + $0x1b8] sm:$0xff]  ;;  %v289_v46 = vld [vmem:[#allocation2 + $0xc0] sm:$0xff]  ;;  %s1232_s23 = smov [#allocation5]  }
  0x40   : > { %951 = vmatpush3.bf16.msra.mxu1 %v950_v25  ;;  %921 = vmatprep.subr.bf16.mxu0 %v920_v26  ;;  %v271_v41 = vld [vmem:[#allocation2 + $0x30] sm:$0xff]  ;;  %v272_v42 = vld [vmem:[#allocation2 + $0x38] sm:$0xff]  ;;  %v956_v43 = vpack.c.bf16 %v320_v40, %v319_v37  ;;  %v290_v47 = vld [vmem:[#allocation2 + $0xc8] sm:$0xff]  ;;  %p1103_p10 = pnand %p1102_p6, %p1528_p9  ;;  %s1105_s27 = sshll.u32 %s1232_s23, 4  ;;  %s1106_s27 = int_to_ptr.vmem [resolvable:$false] %s1105_s27 }
  0x41   : > { %953 = vmatprep.subr.bf16.mxu1 %v952_v30  ;;  %v303_v44 = vld [vmem:[#allocation2 + $0x130] sm:$0xff]  ;;  %v304_v45 = vld [vmem:[#allocation2 + $0x138] sm:$0xff]  ;;  %v321_v48 = vld [vmem:[#allocation2 + $0x1c0] sm:$0xff]  ;;  %v926_v50 = vpack.c.bf16 %v272_v42, %v271_v41  ;;  %v928_v52 = vpack.c.bf16 %v290_v47, %v289_v46  ;;  %s1107_s28 = scalar_lea.vmem %s1106_s27, 512  ;;  %p1108_p2 = scmp.lt.s32.totalorder %s1395_s9, %s1106_s27 }
  0x42   : > { %v322_v49 = vld [vmem:[#allocation2 + $0x1c8] sm:$0xff]  ;;  %v958_v51 = vpack.c.bf16 %v304_v45, %v303_v44  ;;  %v273_v53 = vld [vmem:[#allocation2 + $0x40] sm:$0xff]  ;;  %v291_v58 = vld [vmem:[#allocation2 + $0xd0] sm:$0xff]  ;;  %p1104_p12 = pneg %p1103_p10  ;;  %p1109_p3 = scmp.lt.s32.totalorder %s1107_s28, %s1101_s22 }
  0x43   : > { %923 = vmatpush3.bf16.msra.mxu0 %v922_v34  ;;  %v274_v54 = vld [vmem:[#allocation2 + $0x48] sm:$0xff]  ;;  %v305_v55 = vld [vmem:[#allocation2 + $0x140] sm:$0xff]  ;;  %v960_v56 = vpack.c.bf16 %v322_v49, %v321_v48  ;;  %v292_v59 = vld [vmem:[#allocation2 + $0xd8] sm:$0xff] }
  0x44   : > { %955 = vmatpush3.bf16.msra.mxu1 %v954_v38  ;;  %925 = vmatprep.subr.bf16.mxu0 %v924_v39  ;;  %v306_v57 = vld [vmem:[#allocation2 + $0x148] sm:$0xff]  ;;  %v323_v60 = vld [vmem:[#allocation2 + $0x1d0] sm:$0xff]  ;;  %v324_v61 = vld [vmem:[#allocation2 + $0x1d8] sm:$0xff]  ;;  %v930_v62 = vpack.c.bf16 %v274_v54, %v273_v53  ;;  %v932_v0 = vpack.c.bf16 %v292_v59, %v291_v58  ;;  %p1110_p4 = por %p1109_p3, %p1108_p2 }
  0x45   : > { %957 = vmatprep.subr.bf16.mxu1 %v956_v43  ;;  %v962_v63 = vpack.c.bf16 %v306_v57, %v305_v55  ;;  %v275_v1 = vld [vmem:[#allocation2 + $0x50] sm:$0xff]  ;;  %v276_v2 = vld [vmem:[#allocation2 + $0x58] sm:$0xff]  ;;  %v964_v4 = vpack.c.bf16 %v324_v61, %v323_v60  ;;  %v293_v6 = vld [vmem:[#allocation2 + $0xe0] sm:$0xff] }
  0x46   : > { %v307_v3 = vld [vmem:[#allocation2 + $0x150] sm:$0xff]  ;;  %v308_v5 = vld [vmem:[#allocation2 + $0x158] sm:$0xff]  ;;  %v294_v7 = vld [vmem:[#allocation2 + $0xe8] sm:$0xff]  ;;  %v934_v10 = vpack.c.bf16 %v276_v2, %v275_v1  ;;  %p1111_p7 = pnand %p1110_p4, %p1104_p12 }
  0x47   : > { %927 = vmatpush3.bf16.msra.mxu0 %v926_v50  ;;  %v325_v8 = vld [vmem:[#allocation2 + $0x1e0] sm:$0xff]  ;;  %v326_v9 = vld [vmem:[#allocation2 + $0x1e8] sm:$0xff]  ;;  %v966_v13 = vpack.c.bf16 %v308_v5, %v307_v3  ;;  %v936_v14 = vpack.c.bf16 %v294_v7, %v293_v6  ;;  %v295_v20 = vld [vmem:[#allocation2 + $0xf0] sm:$0xff] }
  0x48   : > { %959 = vmatpush3.bf16.msra.mxu1 %v958_v51  ;;  %929 = vmatprep.subr.bf16.mxu0 %v928_v52  ;;  %v277_v11 = vld [vmem:[#allocation2 + $0x60] sm:$0xff]  ;;  %v278_v12 = vld [vmem:[#allocation2 + $0x68] sm:$0xff]  ;;  %v968_v18 = vpack.c.bf16 %v326_v9, %v325_v8  ;;  %v296_v21 = vld [vmem:[#allocation2 + $0xf8] sm:$0xff] }
  0x49   : > { %961 = vmatprep.subr.bf16.mxu1 %v960_v56  ;;  %v309_v15 = vld [vmem:[#allocation2 + $0x160] sm:$0xff]  ;;  %v1363_v17 = vld [vmem:[%s1357_s5 + $0x8] sm:$0xff]  ;;  %v327_v25 = vld [vmem:[#allocation2 + $0x1f0] sm:$0xff]  ;;  %v938_v28 = vpack.c.bf16 %v278_v12, %v277_v11  ;;  %v940_v31 = vpack.c.bf16 %v296_v21, %v295_v20 }
  0x4a   : > { %v1360_v16 = vld [vmem:[%s1357_s5] sm:$0xff]  ;;  %v310_v19 = vld [vmem:[#allocation2 + $0x168] sm:$0xff]  ;;  %v235_v23 = vrot.slane %v1363_v17, 1  ;;  %v328_v26 = vld [vmem:[#allocation2 + $0x1f8] sm:$0xff]  ;;  %v251_v27 = vrot.slane %v1363_v17, 3  ;;  %v243_v44 = vrot.slane %v1363_v17, 2 }
  0x4b   : > { %931 = vmatpush3.bf16.msra.mxu0 %v930_v62  ;;  %v234_v22 = vrot.slane %v1360_v16, 1  ;;  %v250_v24 = vrot.slane %v1360_v16, 3  ;;  %v970_v30 = vpack.c.bf16 %v310_v19, %v309_v15  ;;  %v279_v32 = vld [vmem:[#allocation2 + $0x70] sm:$0xff]  ;;  %v280_v33 = vld [vmem:[#allocation2 + $0x78] sm:$0xff]  ;;  %v972_v36 = vpack.c.bf16 %v328_v26, %v327_v25  ;;  %v329_v38 = vld [vmem:[#allocation2 + $0x200] sm:$0xff] }
  0x4c   : > { %963 = vmatpush3.bf16.msra.mxu1 %v962_v63  ;;  %933 = vmatprep.subr.bf16.mxu0 %v932_v0  ;;  %v311_v34 = vld [vmem:[#allocation2 + $0x170] sm:$0xff]  ;;  %v312_v37 = vld [vmem:[#allocation2 + $0x178] sm:$0xff]  ;;  %v330_v39 = vld [vmem:[#allocation2 + $0x208] sm:$0xff]  ;;  %v942_v41 = vpack.c.bf16 %v280_v33, %v279_v32  ;;  %v242_v43 = vrot.slane %v1360_v16, 2  ;;  %v258_v56 = vrot.slane %v1360_v16, 4  ;;  %v259_v57 = vrot.slane %v1363_v17, 4 }
  0x4d   : > { %965 = vmatprep.subr.bf16.mxu1 %v964_v4  ;;  %v236_v29 = vsel %vm233_vm0, %v234_v22, %v235_v23  ;;  %v252_v35 = vsel %vm249_vm1, %v250_v24, %v251_v27  ;;  %v1372_v40 = vld [vmem:[%s1357_s5 + $0x10] sm:$0xf]  ;;  %v974_v42 = vpack.c.bf16 %v312_v37, %v311_v34  ;;  %v976_v45 = vpack.c.bf16 %v330_v39, %v329_v38  ;;  %v332_v47 = vld [vmem:[#allocation2 + $0x218] sm:$0xff]  ;;  %v333_v53 = vld [vmem:[#allocation2 + $0x220] sm:$0xff] }
  0x4e   : > { %409 = vmatprep.mubr.f32.mxu0 %v236_v29  ;;  %484 = vmatprep.mubr.f32.mxu1 %v252_v35  ;;  %v331_v46 = vld [vmem:[#allocation2 + $0x210] sm:$0xff]  ;;  %v237_v48 = vrot.slane %v1372_v40, 1  ;;  %v253_v49 = vrot.slane %v1372_v40, 3  ;;  %v244_v50 = vsel %vm241_vm2, %v242_v43, %v243_v44  ;;  %v245_v52 = vrot.slane %v1372_v40, 2  ;;  %v334_v54 = vld [vmem:[#allocation2 + $0x228] sm:$0xff]  ;;  %v336_v62 = vld [vmem:[#allocation2 + $0x238] sm:$0xff] }
  0x4f   : > { %935 = vmatpush3.bf16.msra.mxu0 %v934_v10  ;;  %v980_v51 = vpack.c.bf16 %v332_v47, %v331_v46  ;;  %v984_v59 = vpack.c.bf16 %v334_v54, %v333_v53  ;;  %v335_v61 = vld [vmem:[#allocation2 + $0x230] sm:$0xff]  ;;  %v260_v63 = vsel %vm257_vm3, %v258_v56, %v259_v57  ;;  %v337_v1 = vld [vmem:[#allocation2 + $0x240] sm:$0xff]  ;;  %v338_v2 = vld [vmem:[#allocation2 + $0x248] sm:$0xff] }
  0x50   : > { %967 = vmatpush3.bf16.msra.mxu1 %v966_v13  ;;  %937 = vmatprep.subr.bf16.mxu0 %v936_v14  ;;  %v238_v55 = vsel %vm233_vm0, %v235_v23, %v237_v48  ;;  %v254_v58 = vsel %vm249_vm1, %v251_v27, %v253_v49  ;;  %v246_v60 = vsel %vm241_vm2, %v243_v44, %v245_v52  ;;  %v339_v4 = vld [vmem:[#allocation2 + $0x250] sm:$0xff]  ;;  %v340_v5 = vld [vmem:[#allocation2 + $0x258] sm:$0xff]  ;;  %v341_v7 = vld [vmem:[#allocation2 + $0x260] sm:$0xff]  ;;  %v261_v13 = vrot.slane %v1372_v40, 4 }
  0x51   : > { %969 = vmatprep.subr.bf16.mxu1 %v968_v18  ;;  %v988_v0 = vpack.c.bf16 %v336_v62, %v335_v61  ;;  %v992_v3 = vpack.c.bf16 %v338_v2, %v337_v1  ;;  %v996_v6 = vpack.c.bf16 %v340_v5, %v339_v4  ;;  %v342_v8 = vld [vmem:[#allocation2 + $0x268] sm:$0xff]  ;;  %v343_v10 = vld [vmem:[#allocation2 + $0x270] sm:$0xff]  ;;  %v344_v11 = vld [vmem:[#allocation2 + $0x278] sm:$0xff] }
  0x52   : > { %v1000_v9 = vpack.c.bf16 %v342_v8, %v341_v7  ;;  %v1004_v12 = vpack.c.bf16 %v344_v11, %v343_v10  ;;  %v262_v14 = vsel %vm257_vm3, %v259_v57, %v261_v13 }
  0x53   : > { %939 = vmatpush3.bf16.msra.mxu0 %v938_v28 }
  0x54   : > { %971 = vmatpush3.bf16.msra.mxu1 %v970_v30  ;;  %941 = vmatprep.subr.bf16.mxu0 %v940_v31 }
  0x55   : > { %973 = vmatprep.subr.bf16.mxu1 %v972_v36 }
  0x57   : > { %943 = vmatpush3.bf16.msra.mxu0 %v942_v41 }
  0x58   : > { %975 = vmatpush3.bf16.msra.mxu1 %v974_v42  ;;  %977 = vmatprep.subr.bf16.mxu0 %v976_v45 }
  0x5a   : > { %410 = vmatmul.mubr.f32.vlgmr.msra.gmra.mrb[0].mxu0 %v1360_v16 }
  0x5b   : > { %485 = vmatmul.mubr.f32.vlgmr.msra.gmra.mrb[0].mxu1 %v244_v50  ;;  %979 = vmatpush3.bf16.msra.mxu0 %v976_v45 }
  0x5c   : > { %981 = vmatprep.subr.bf16.mxu0 %v980_v51  ;;  %414 = vmatprep.mubr.f32.mxu0 %v238_v55 }
  0x5d   : > { %489 = vmatprep.mubr.f32.mxu1 %v254_v58 }
  0x5e   : > { %415 = vmatmul.mubr.f32.gmra.mrb[2].mxu0 %v1363_v17 }
  0x5f   : > { %983 = vmatpush3.bf16.msra.mxu0 %v980_v51  ;;  %490 = vmatmul.mubr.f32.gmra.mrb[2].mxu1 %v246_v60 }
  0x60   : > { %985 = vmatprep.subr.bf16.mxu0 %v984_v59  ;;  %909 = vmatprep.mubr.f32.mxu0 %v260_v63 }
  0x63   : > { %987 = vmatpush3.bf16.msra.mxu0 %v984_v59 }
  0x64   : > { %989 = vmatprep.subr.bf16.mxu0 %v988_v0 }
  0x67   : > { %991 = vmatpush3.bf16.msra.mxu0 %v988_v0 }
  0x68   : > { %993 = vmatprep.subr.bf16.mxu0 %v992_v3 }
  0x6b   : > { %995 = vmatpush3.bf16.msra.mxu0 %v992_v3 }
  0x6c   : > { %997 = vmatprep.subr.bf16.mxu0 %v996_v6 }
  0x6f   : > { %999 = vmatpush3.bf16.msra.mxu0 %v996_v6 }
  0x70   : > { %1001 = vmatprep.subr.bf16.mxu0 %v1000_v9 }
  0x73   : > { %1003 = vmatpush3.bf16.msra.mxu0 %v1000_v9 }
  0x74   : > { %1005 = vmatprep.subr.bf16.mxu0 %v1004_v12 }
  0x77   : > { %1007 = vmatpush3.bf16.msra.mxu0 %v1004_v12 }
  0x7a   : > { %910 = vmatmul.mubr.f32.vlgmr.msra.gmra.mrb[4].mxu0 %v262_v14 }
 0x12d   : > { %v815_v15 = vpop.f32.mrb[0].mxu0 }
 0x12e   : > { %v853_v16 = vpop.f32.mrb[0].mxu1  ;;  %v816_v17 = vpop.f32.mrb[1].mxu0 }
 0x12f   : > { %v817_v18 = vadd.f32 %v816_v17, %v815_v15  ;;  %v854_v19 = vpop.f32.mrb[1].mxu1 }
 0x130   : > { %v855_v20 = vadd.f32 %v854_v19, %v853_v16 }
 0x131   : > { %v818_v21 = vpop.f32.mrb[2].mxu0 }
 0x132   : > { %v856_v22 = vpop.f32.mrb[2].mxu1  ;;  %v819_v23 = vpop.f32.mrb[3].mxu0  ;;  %v487_v24 = vadd.f32 %v855_v20, %v817_v18 }
 0x133   : > { %v820_v25 = vadd.f32 %v819_v23, %v818_v21  ;;  %v857_v26 = vpop.f32.mrb[3].mxu1 }
 0x134   : > { %v858_v27 = vadd.f32 %v857_v26, %v856_v22 }
 0x136   : > { %v492_v28 = vadd.f32 %v858_v27, %v820_v25 }
 0x14d   : > { %v911_v29 = vpop.f32.mrb[4].mxu0 }
 0x14e   : > { %v567_v30 = vadd.f32 %v911_v29, %v492_v28  ;;  %v561_v31 = vpop.f32.mrb[5].mxu0 }
 0x14f   : > { %v562_v32 = vadd.f32 %v561_v31, %v487_v24 }
 0x150   : > { %v571_v33 = vmax.f32 %v567_v30, 0.0 }
 0x151   : > { %v570_v34 = vmax.f32 %v562_v32, 0.0 }
 0x152   : > { %573 = vst [vmem:[%s209_s8 + $0x8] sm:$0xff] %v571_v33  ;;  %v583_v35 = vmul.f32 %v571_v33, %v571_v33 }
 0x153   : > { %572 = vst [vmem:[%s209_s8] sm:$0xff] %v570_v34  ;;  %v574_v36 = vadd.f32 %v571_v33, %v570_v34  ;;  %v582_v37 = vmul.f32 %v570_v34, %v570_v34 }
 0x154   : > { %1114 = shalt.err (!%p1111_p7)
}
 0x155   : > { %s1115_s29 = scalar_lea.hbm %s1400_s13, 256  ;;  %s1119_s7 = scalar_lea.hbm %s1515_s2, 512 }
 0x156   : > { %p1116_p8 = scmp.ne.s32.totalorder %s1400_s13, %s1115_s29  ;;  %p1120_p1 = scmp.lt.u32.totalorder %s1400_s13, %s1515_s2 }
 0x157   : > { %p1121_p0 = scmp.lt.u32.totalorder %s1119_s7, %s1115_s29  ;;  %p1123_p6 = scmp.lt.u32.totalorder %s1115_s29, %s1400_s13 }
 0x158   : > { %p1117_p11 = pnand %p1116_p8, %p1528_p9 }
 0x159   : > { %p1122_p5 = por %p1121_p0, %p1120_p1 }
 0x15a   : > { %p1118_p13 = pneg %p1117_p11 }
 0x15b   : > { %p1124_p10 = por %p1123_p6, %p1122_p5 }
 0x15d   : > { %p1125_p12 = pnand %p1124_p10, %p1118_p13 }
 0x15f   : > { %1128 = shalt.err (!%p1125_p12)
}
 0x160   : > { %s1233_s11 = smov 128   ;;  %s1234_s12 = smov 8   ;;  %v575_v38 = vrot.slane %v574_v36, 4  ;;  %v584_v39 = vadd.f32 %v583_v35, %v582_v37 }
 0x161   : > { %1013 = dma.vmem_to_hbm [thread:$0]  (%p1528_p9), %s1395_s9, 256, %s1400_s13, %s593_s14, %s1233_s11, %s1233_s11, %s1234_s12  }
 0x162   : > { %v576_v40 = vadd.f32 %v575_v38, %v574_v36  ;;  %v585_v41 = vrot.slane %v584_v39, 4  ;;  %s597_s22 = sand.u32 1, %s1283_s19   ;;  %s778_s23 = sshll.u32 %s1283_s19, 4 }
 0x163   : > { %s215_s27 = scalar_lea.vmem [#allocation6], %s1391_s6  ;;  %s221_s29 = scalar_lea.vmem [#allocation8], %s1391_s6 }
 0x164   : > { %v577_v42 = vrot.slane %v576_v40, 2  ;;  %v586_v43 = vadd.f32 %v585_v41, %v584_v39  ;;  %s630_s28 = sshll.u32 %s215_s27, 4  ;;  %s643_s30 = sshll.u32 %s221_s29, 4  ;;  %s1437_s28 = int_to_ptr.vmem [resolvable:$true] %s630_s28  ;;  %s1444_s30 = int_to_ptr.vmem [resolvable:$true] %s643_s30 }
 0x165   : > { %s1435_s14 = scalar_lea.hbm %s1516_s3, %s778_s23  ;;  %s1442_s7 = scalar_lea.hbm %s1517_s4, %s778_s23 }
 0x166   : > { %v578_v44 = vadd.f32 %v577_v42, %v576_v40  ;;  %v587_v45 = vrot.slane %v586_v43, 2  ;;  %s1446_s8 = scalar_lea.sflag [#allocation7], %s597_s22  ;;  %s1129_s10 = scalar_lea.vmem %s1437_s28, 16 }
 0x167   : > { %p1130_p2 = scmp.ne.s32.totalorder %s1437_s28, %s1129_s10  ;;  %s1235_s11 = smov [#allocation6]  }
 0x168   : > { %v579_v46 = vrot.slane %v578_v44, 1  ;;  %v588_v47 = vadd.f32 %v587_v45, %v586_v43  ;;  %s1133_s12 = sshll.u32 %s1235_s11, 4  ;;  %s1134_s12 = int_to_ptr.vmem [resolvable:$false] %s1133_s12 }
 0x169   : > { %p1131_p3 = pnand %p1130_p2, %p1528_p9  ;;  %s1135_s9 = scalar_lea.vmem %s1134_s12, 32 }
 0x16a   : > { %v589_v48 = vrot.slane %v588_v47, 1  ;;  %v580_v49 = vadd.f32 %v579_v46, %v578_v44  ;;  %p1136_p7 = scmp.lt.s32.totalorder %s1437_s28, %s1134_s12  ;;  %p1137_p8 = scmp.lt.s32.totalorder %s1135_s9, %s1129_s10 }
 0x16b   : > { %p1132_p4 = pneg %p1131_p3 }
 0x16c   : > { %581 = vst [vmem:[%s215_s27] sm:$0x1] %v580_v49  ;;  %v590_v50 = vadd.f32 %v589_v48, %v588_v47  ;;  %p1138_p11 = por %p1137_p8, %p1136_p7 }
 0x16e   : > { %p1139_p13 = pnand %p1138_p11, %p1132_p4 }
 0x170   : > { %1142 = shalt.err (!%p1139_p13)
}
 0x171   : > { %s1143_s22 = scalar_lea.hbm %s1435_s14, 16  ;;  %s1147_s13 = scalar_lea.hbm %s1516_s3, 32 }
 0x172   : > { %p1144_p1 = scmp.ne.s32.totalorder %s1435_s14, %s1143_s22  ;;  %p1148_p6 = scmp.lt.u32.totalorder %s1435_s14, %s1516_s3 }
 0x173   : > { %p1149_p10 = scmp.lt.u32.totalorder %s1147_s13, %s1143_s22  ;;  %p1151_p2 = scmp.lt.u32.totalorder %s1143_s22, %s1435_s14 }
 0x174   : > { %p1145_p0 = pnand %p1144_p1, %p1528_p9 }
 0x175   : > { %p1150_p12 = por %p1149_p10, %p1148_p6 }
 0x176   : > { %p1146_p5 = pneg %p1145_p0 }
 0x177   : > { %p1152_p3 = por %p1151_p2, %p1150_p12 }
 0x179   : > { %p1153_p4 = pnand %p1152_p3, %p1146_p5 }
 0x17b   : > { %1156 = shalt.err (!%p1153_p4)
}
 0x17c   : > { %1014 = dma.vmem_to_hbm [thread:$0]  (%p1528_p9), %s1437_s28, 16, %s1435_s14, %s1446_s8   ;;  %591 = vst [vmem:[%s221_s29] sm:$0x1] %v590_v50 }
 0x17d   : > { %s1157_s10 = scalar_lea.vmem %s1444_s30, 16  ;;  %s1236_s11 = smov [#allocation8]  }
 0x17e   : > { %p1158_p7 = scmp.ne.s32.totalorder %s1444_s30, %s1157_s10  ;;  %s1161_s12 = sshll.u32 %s1236_s11, 4  ;;  %s1162_s12 = int_to_ptr.vmem [resolvable:$false] %s1161_s12 }
 0x17f   : > { %s1163_s9 = scalar_lea.vmem %s1162_s12, 32  ;;  %p1164_p13 = scmp.lt.s32.totalorder %s1444_s30, %s1162_s12 }
 0x180   : > { %p1159_p8 = pnand %p1158_p7, %p1528_p9  ;;  %p1165_p1 = scmp.lt.s32.totalorder %s1163_s9, %s1157_s10 }
 0x182   : > { %p1160_p11 = pneg %p1159_p8  ;;  %p1166_p0 = por %p1165_p1, %p1164_p13 }
 0x184   : > { %p1167_p5 = pnand %p1166_p0, %p1160_p11 }
 0x186   : > { %1170 = shalt.err (!%p1167_p5)
}
 0x187   : > { %s1171_s6 = scalar_lea.hbm %s1442_s7, 16  ;;  %s1175_s14 = scalar_lea.hbm %s1517_s4, 32 }
 0x188   : > { %p1172_p6 = scmp.ne.s32.totalorder %s1442_s7, %s1171_s6  ;;  %p1176_p2 = scmp.lt.u32.totalorder %s1442_s7, %s1517_s4 }
 0x189   : > { %p1177_p3 = scmp.lt.u32.totalorder %s1175_s14, %s1171_s6  ;;  %p1179_p7 = scmp.lt.u32.totalorder %s1171_s6, %s1442_s7 }
 0x18a   : > { %p1173_p10 = pnand %p1172_p6, %p1528_p9 }
 0x18b   : > { %p1178_p4 = por %p1177_p3, %p1176_p2 }
 0x18c   : > { %p1174_p12 = pneg %p1173_p10 }
 0x18d   : > { %p1180_p8 = por %p1179_p7, %p1178_p4 }
 0x18f   : > { %p1181_p11 = pnand %p1180_p8, %p1174_p12 }
 0x191   : > { %1184 = shalt.err (!%p1181_p11)
}
 0x192   : > { %1015 = dma.vmem_to_hbm [thread:$0]  (%p1528_p9), %s1444_s30, 16, %s1442_s7, %s1446_s8  }
 0x193 PF: > { %p1035_p13 = scmp.ge.s32.totalorder %s1227_s18, 2  ;;  %s655_s27 = sand.u32 1, %s1215_s15  }
 0x194   : > { %p1529_p1 = scmp.ne.s32.totalorder %s1522_s26, 0  ;;  %s656_s13 = scalar_lea.sflag [#allocation4], %s655_s27 }
 0x196   : > { %p1024_p0 = pnand %p1035_p13, %p1529_p1 }
 0x198   : > { %1206 = dma.done.wait (!%p1024_p0), %s656_s13, 256  }
 0x199   : > { %1208 = vsyncadd (!%p1024_p0), %s656_s13, 4294967040  ;;  %s664_s19 = sand.u32 1, %s767_s20  }
 0x19a   : > { %s665_s5 = scalar_lea.sflag [#allocation7], %s664_s19 }
 0x19b   : > { %1210 = dma.done.wait (!%p1024_p0), %s665_s5, 32  }
 0x19c   : > { %1212 = vsyncadd (!%p1024_p0), %s665_s5, 4294967264  ;;  %p19_p9 = scmp.ge.s32.totalorder %s1287_s21, 4   ;;  %s1530_s15 = smov %s1219_s16 }
 0x19d   : > { %s1531_s16 = smov %s1223_s17  ;;  %s1532_s17 = smov %s1300_s24 }
 0x19e   : > { %s1533_s18 = smov %s1287_s21  ;;  %21 = sbr.rel (!%p19_p9) target bundleno = 6 (0x6), region = 100 }
 0x1a5   :  { %677 = vsyncpa [#allocation3], 1 }
 0x1a6   :  { %679 = vsyncpa [#allocation3 + $0x1], 1 }
 0x1a7   :  { %680 = vsyncpa [#allocation4], 1 }
 0x1a8   :  { %682 = vsyncpa [#allocation4 + $0x1], 1 }
 0x1a9   :  { %683 = vsyncpa [#allocation7], 1 }
 0x1aa   :  { %685 = vsyncpa [#allocation7 + $0x1], 1 }

</bundles_post_ra>
